<compile_context>
chip_gen: v7x
topology: tpu7x:2x2x1
jax: 0.10.0
libtpu: 0.0.40
codegen_flags: <defaults>
</compile_context>

<pallas_src>
import functools
import math

import jax
import jax.numpy as jnp
from jax.experimental import pallas as pl
from jax.experimental.pallas import tpu as pltpu

NEG_SLOPE = 0.01   # PyTorch nn.LeakyReLU default
BN_EPS = 1e-5      # PyTorch nn.BatchNorm1d default
LANE = 128         # TPU lane width


def _round_up(n, m):
    return ((n + m - 1) // m) * m


# ---------------------------------------------------------------------------
# Fused Pallas kernel: whole LinearNet on one batch tile.
#   refs = (x_ref, w1, s1, w2, s2, ..., wN, sN, o_ref)
#   layer i:  h = h @ w_i + s_i  ; LeakyReLU if apply_acts[i]
# ---------------------------------------------------------------------------
def _linear_net_kernel(*refs, apply_acts):
    n = len(apply_acts)
    x_ref = refs[0]
    o_ref = refs[1 + 2 * n]

    h = x_ref[...]
    for i in range(n):
        w_ref = refs[1 + 2 * i]
        s_ref = refs[2 + 2 * i]
        h = jnp.dot(h, w_ref[...], preferred_element_type=jnp.float32)
        h = h + s_ref[...]                      # folded bias + BN affine
        if apply_acts[i]:
            h = jnp.maximum(h, NEG_SLOPE * h)   # LeakyReLU as a single max
    o_ref[...] = h.astype(o_ref.dtype)


# ---------------------------------------------------------------------------
# Parameter construction (deterministic, mimics PyTorch nn.Linear init ranges).
# Folds BN into W/shift and zero-pads feature dims to multiples of 128 lanes.
# ---------------------------------------------------------------------------
def init_linear_net_params(key, hidden_units, batch_normalization=True,
                           last_layer_is_final=True):
    n_blocks = len(hidden_units) - 1
    if isinstance(batch_normalization, bool):
        batch_normalization = [batch_normalization] * n_blocks

    ws, shifts, acts = [], [], []
    in_pad = hidden_units[0]  # first layer's input width is left unpadded
    for i in range(n_blocks):
        fan_in, fan_out = hidden_units[i], hidden_units[i + 1]
        out_pad = _round_up(fan_out, LANE)

        key, kw, kb = jax.random.split(key, 3)
        bound = 1.0 / math.sqrt(fan_in)
        # stored as (in, out) == PyTorch weight (out, in) transposed
        w = jax.random.uniform(kw, (fan_in, fan_out), jnp.float32, -bound, bound)
        b = jax.random.uniform(kb, (1, fan_out), jnp.float32, -bound, bound)

        is_final = (i == n_blocks - 1) and last_layer_is_final
        if (not is_final) and batch_normalization[i]:
            # PyTorch BatchNorm1d defaults: gamma=1, beta=0, mean=0, var=1
            gamma = jnp.ones((1, fan_out), jnp.float32)
            beta = jnp.zeros((1, fan_out), jnp.float32)
            running_mean = jnp.zeros((1, fan_out), jnp.float32)
            running_var = jnp.ones((1, fan_out), jnp.float32)
            scale = gamma / jnp.sqrt(running_var + BN_EPS)
            shift = beta - running_mean * scale
        else:
            scale = jnp.ones((1, fan_out), jnp.float32)
            shift = jnp.zeros((1, fan_out), jnp.float32)

        # One-time static fold: BN scale into W columns, bias into shift.
        w_folded = w * scale                  # (fan_in, fan_out)
        shift_folded = b * scale + shift      # (1, fan_out)

        # Zero-pad: rows to previous layer's padded width, cols to 128-multiple.
        # Padded columns stay exactly 0 through LeakyReLU, so padding is inert.
        w_p = jnp.zeros((in_pad, out_pad), jnp.float32)
        w_p = w_p.at[:fan_in, :fan_out].set(w_folded)
        s_p = jnp.zeros((1, out_pad), jnp.float32)
        s_p = s_p.at[:, :fan_out].set(shift_folded)

        ws.append(w_p)
        shifts.append(s_p)
        acts.append(not is_final)
        in_pad = out_pad

    return dict(w=ws, shift=shifts, apply_act=acts,
                in_features=hidden_units[0], out_features=hidden_units[-1])


# ---------------------------------------------------------------------------
# Wrapper: single pallas_call for the whole net, batch tiled + parallel axis.
# ---------------------------------------------------------------------------
def linear_net_forward(params, x, *, block_batch=512):
    B, In = x.shape
    out_pad = params["w"][-1].shape[1]
    out_features = params["out_features"]

    # Batch tile: multiple of 8 sublanes, capped so tiles stay well inside VMEM
    # (weights are tiny and replicated across tiles).
    if B <= block_batch:
        TB = B
    else:
        TB = max(8, (block_batch // 8) * 8)
    grid = (pl.cdiv(B, TB),)

    in_specs = [pl.BlockSpec((TB, In), lambda i: (i, 0))]
    operands = [x]
    for w, s in zip(params["w"], params["shift"]):
        in_specs.append(pl.BlockSpec(w.shape, lambda i: (0, 0)))
        in_specs.append(pl.BlockSpec(s.shape, lambda i: (0, 0)))
        operands.append(w)
        operands.append(s)

    kernel = functools.partial(_linear_net_kernel,
                               apply_acts=tuple(params["apply_act"]))

    out_padded = pl.pallas_call(
        kernel,
        out_shape=jax.ShapeDtypeStruct((B, out_pad), x.dtype),
        grid=grid,
        in_specs=in_specs,
        out_specs=pl.BlockSpec((TB, out_pad), lambda i: (i, 0)),
        compiler_params=pltpu.CompilerParams(
            dimension_semantics=("parallel",)),
    )(*operands)

    # Slice off the lane padding of the final layer.
    return out_padded[:, :out_features]


# ---------------------------------------------------------------------------
def _reference_forward(params, x):
    """Pure-JAX reference with the same folded/padded params (for sanity check)."""
    h = x
    for w, s, act in zip(params["w"], params["shift"], params["apply_act"]):
        h = h @ w + s
        if act:
            h = jnp.maximum(h, NEG_SLOPE * h)
    return h[:, :params["out_features"]]


if __name__ == "__main__":
    # LinearNet(hidden_units=[32, 64, 48, 16], activation='leaky_relu',
    #           dropout_rate=0.1, batch_normalization=True,
    #           last_layer_is_final=True)   -- eval-mode forward
    hidden_units = [32, 64, 48, 16]
    batch = 8

    key = jax.random.PRNGKey(0)
    key, kx = jax.random.split(key)
    x = jax.random.normal(kx, (batch, hidden_units[0]), jnp.float32)

    params = init_linear_net_params(key, hidden_units,
                                    batch_normalization=True,
                                    last_layer_is_final=True)

    out = linear_net_forward(params, x)
    out = jax.block_until_ready(out)

    assert out.shape == (batch, hidden_units[-1]), out.shape
    assert bool(jnp.all(jnp.isfinite(out))), "non-finite output"

    ref = _reference_forward(params, x)
    assert bool(jnp.allclose(out, ref, rtol=2e-4, atol=2e-4)), "mismatch vs reference"

    print("KERNEL_OK")
</pallas_src>

<mosaic_0001>
module attributes {stable_mosaic.version = 11 : i64} {
  func.func @_linear_net_kernel(%arg0: i32, %arg1: memref<8x32xf32, #tpu.memory_space<vmem>>, %arg2: memref<32x128xf32, #tpu.memory_space<vmem>>, %arg3: memref<1x128xf32, #tpu.memory_space<vmem>>, %arg4: memref<128x128xf32, #tpu.memory_space<vmem>>, %arg5: memref<1x128xf32, #tpu.memory_space<vmem>>, %arg6: memref<128x128xf32, #tpu.memory_space<vmem>>, %arg7: memref<1x128xf32, #tpu.memory_space<vmem>>, %arg8: memref<8x128xf32, #tpu.memory_space<vmem>>) attributes {dimension_semantics = [#tpu.dimension_semantics<parallel>], iteration_bounds = array<i64: 1>, scalar_prefetch = 0 : i64, scratch_operands = 0 : i64, tpu.core_type = #tpu.core_type<tc>, window_params = [{transform_indices = @transform_0, window_bounds = array<i64: 8, 32>}, {pipeline_mode = #tpu.pipeline_mode<synchronous>, transform_indices = @transform_1, window_bounds = array<i64: 32, 128>}, {pipeline_mode = #tpu.pipeline_mode<synchronous>, transform_indices = @transform_2, window_bounds = array<i64: 1, 128>}, {pipeline_mode = #tpu.pipeline_mode<synchronous>, transform_indices = @transform_3, window_bounds = array<i64: 128, 128>}, {pipeline_mode = #tpu.pipeline_mode<synchronous>, transform_indices = @transform_4, window_bounds = array<i64: 1, 128>}, {pipeline_mode = #tpu.pipeline_mode<synchronous>, transform_indices = @transform_5, window_bounds = array<i64: 128, 128>}, {pipeline_mode = #tpu.pipeline_mode<synchronous>, transform_indices = @transform_6, window_bounds = array<i64: 1, 128>}, {transform_indices = @transform_7, window_bounds = array<i64: 8, 128>}]} {
    %c0 = arith.constant 0 : index
    %c0_0 = arith.constant 0 : index
    %0 = vector.load %arg1[%c0, %c0_0] : memref<8x32xf32, #tpu.memory_space<vmem>>, vector<8x32xf32>
    %c0_1 = arith.constant 0 : index
    %c0_2 = arith.constant 0 : index
    %1 = vector.load %arg2[%c0_1, %c0_2] : memref<32x128xf32, #tpu.memory_space<vmem>>, vector<32x128xf32>
    %cst = arith.constant dense<0.000000e+00> : vector<8x128xf32>
    %2 = tpu.matmul %0, %1, %cst {dimension_numbers = #tpu.dot_dimension_numbers<[1], [0], [0], [1], [0, 0, 1, 1], [], []>} : vector<8x32xf32>, vector<32x128xf32>, vector<8x128xf32> -> vector<8x128xf32>
    %c0_3 = arith.constant 0 : index
    %c0_4 = arith.constant 0 : index
    %3 = vector.load %arg3[%c0_3, %c0_4] : memref<1x128xf32, #tpu.memory_space<vmem>>, vector<1x128xf32>
    %4 = vector.broadcast %3 : vector<1x128xf32> to vector<8x128xf32>
    %5 = arith.addf %2, %4 : vector<8x128xf32>
    %cst_5 = arith.constant 0.00999999977 : f32
    %6 = vector.broadcast %cst_5 : f32 to vector<8x128xf32>
    %7 = arith.mulf %6, %5 : vector<8x128xf32>
    %8 = arith.maximumf %5, %7 : vector<8x128xf32>
    %c0_6 = arith.constant 0 : index
    %c0_7 = arith.constant 0 : index
    %9 = vector.load %arg4[%c0_6, %c0_7] : memref<128x128xf32, #tpu.memory_space<vmem>>, vector<128x128xf32>
    %cst_8 = arith.constant dense<0.000000e+00> : vector<8x128xf32>
    %10 = tpu.matmul %8, %9, %cst_8 {dimension_numbers = #tpu.dot_dimension_numbers<[1], [0], [0], [1], [0, 0, 1, 1], [], []>} : vector<8x128xf32>, vector<128x128xf32>, vector<8x128xf32> -> vector<8x128xf32>
    %c0_9 = arith.constant 0 : index
    %c0_10 = arith.constant 0 : index
    %11 = vector.load %arg5[%c0_9, %c0_10] : memref<1x128xf32, #tpu.memory_space<vmem>>, vector<1x128xf32>
    %12 = vector.broadcast %11 : vector<1x128xf32> to vector<8x128xf32>
    %13 = arith.addf %10, %12 : vector<8x128xf32>
    %cst_11 = arith.constant 0.00999999977 : f32
    %14 = vector.broadcast %cst_11 : f32 to vector<8x128xf32>
    %15 = arith.mulf %14, %13 : vector<8x128xf32>
    %16 = arith.maximumf %13, %15 : vector<8x128xf32>
    %c0_12 = arith.constant 0 : index
    %c0_13 = arith.constant 0 : index
    %17 = vector.load %arg6[%c0_12, %c0_13] : memref<128x128xf32, #tpu.memory_space<vmem>>, vector<128x128xf32>
    %cst_14 = arith.constant dense<0.000000e+00> : vector<8x128xf32>
    %18 = tpu.matmul %16, %17, %cst_14 {dimension_numbers = #tpu.dot_dimension_numbers<[1], [0], [0], [1], [0, 0, 1, 1], [], []>} : vector<8x128xf32>, vector<128x128xf32>, vector<8x128xf32> -> vector<8x128xf32>
    %c0_15 = arith.constant 0 : index
    %c0_16 = arith.constant 0 : index
    %19 = vector.load %arg7[%c0_15, %c0_16] : memref<1x128xf32, #tpu.memory_space<vmem>>, vector<1x128xf32>
    %20 = vector.broadcast %19 : vector<1x128xf32> to vector<8x128xf32>
    %21 = arith.addf %18, %20 : vector<8x128xf32>
    %c0_17 = arith.constant 0 : index
    %c0_18 = arith.constant 0 : index
    %22 = vector.load %arg8[%c0_17, %c0_18] : memref<8x128xf32, #tpu.memory_space<vmem>>, vector<8x128xf32>
    tpu.vector_store %arg8[%c0_17, %c0_18], %21 {strides = array<i32>} : memref<8x128xf32, #tpu.memory_space<vmem>>, vector<8x128xf32>,
    return
  }
  func.func @transform_0(%arg0: i32) -> (i32, i32) {
    %c0_i32 = arith.constant 0 : i32
    %c0_i32_0 = arith.constant 0 : i32
    return %arg0, %c0_i32 : i32, i32
  }
  func.func @transform_1(%arg0: i32) -> (i32, i32) {
    %c0_i32 = arith.constant 0 : i32
    %c0_i32_0 = arith.constant 0 : i32
    %c0_i32_1 = arith.constant 0 : i32
    return %c0_i32, %c0_i32_0 : i32, i32
  }
  func.func @transform_2(%arg0: i32) -> (i32, i32) {
    %c0_i32 = arith.constant 0 : i32
    %c0_i32_0 = arith.constant 0 : i32
    %c0_i32_1 = arith.constant 0 : i32
    return %c0_i32, %c0_i32_0 : i32, i32
  }
  func.func @transform_3(%arg0: i32) -> (i32, i32) {
    %c0_i32 = arith.constant 0 : i32
    %c0_i32_0 = arith.constant 0 : i32
    %c0_i32_1 = arith.constant 0 : i32
    return %c0_i32, %c0_i32_0 : i32, i32
  }
  func.func @transform_4(%arg0: i32) -> (i32, i32) {
    %c0_i32 = arith.constant 0 : i32
    %c0_i32_0 = arith.constant 0 : i32
    %c0_i32_1 = arith.constant 0 : i32
    return %c0_i32, %c0_i32_0 : i32, i32
  }
  func.func @transform_5(%arg0: i32) -> (i32, i32) {
    %c0_i32 = arith.constant 0 : i32
    %c0_i32_0 = arith.constant 0 : i32
    %c0_i32_1 = arith.constant 0 : i32
    return %c0_i32, %c0_i32_0 : i32, i32
  }
  func.func @transform_6(%arg0: i32) -> (i32, i32) {
    %c0_i32 = arith.constant 0 : i32
    %c0_i32_0 = arith.constant 0 : i32
    %c0_i32_1 = arith.constant 0 : i32
    return %c0_i32, %c0_i32_0 : i32, i32
  }
  func.func @transform_7(%arg0: i32) -> (i32, i32) {
    %c0_i32 = arith.constant 0 : i32
    %c0_i32_0 = arith.constant 0 : i32
    return %arg0, %c0_i32 : i32, i32
  }
}

</mosaic_0001>

<bundles_post_ra>
// kernel: tpu_custom_call.1
= control target key start
LH: loop header
LB: loop body
LE: loop exit
PB: predicated region body
PF: predicated region fallthrough
CT: control target
= control target key end

     0   :  { %12 = vsyncpa [#allocation3], 0  ;;  %s829_s0 = inlined_call_operand.hbm [shape: f32[8,32], index: 0, kind: input, shape index: {}]   ;;  %s830_s1 = inlined_call_operand.hbm [shape: f32[32,128], index: 1, kind: input, shape index: {}]   ;;  %s831_s2 = inlined_call_operand.vmem [shape: f32[1,128], index: 2, kind: input, shape index: {}]   ;;  %s832_s3 = inlined_call_operand.hbm [shape: f32[128,128], index: 3, kind: input, shape index: {}]   ;;  %s833_s4 = inlined_call_operand.vmem [shape: f32[1,128], index: 4, kind: input, shape index: {}]   ;;  %s834_s5 = inlined_call_operand.hbm [shape: f32[128,128], index: 5, kind: input, shape index: {}]   ;;  %s835_s6 = inlined_call_operand.vmem [shape: f32[1,128], index: 6, kind: input, shape index: {}]   ;;  %s836_s7 = inlined_call_operand.hbm [shape: f32[8,128], index: 7, kind: output, shape index: {}]  }
   0x1   :  { %13 = vsyncpa [#allocation6], 0 }
   0x2   :  { %14 = vsyncpa [#allocation9], 0 }
   0x3   :  { %15 = vsyncpa [#allocation4], 0  ;;  %s680_s24 = smov [#allocation5]   ;;  %s562_s28 = scalar_lea.hbm %s830_s1, 512 }
   0x4   :  { %s31_s25 = sshll.u32 %s680_s24, 4  ;;  %p563_p0 = scmp.ne.s32.totalorder %s830_s1, %s562_s28  ;;  %s32_s25 = int_to_ptr.vmem [resolvable:$true] %s31_s25 }
   0x5   :  { %p566_p1 = scmp.lt.u32.totalorder %s562_s28, %s830_s1 }
   0x7   :  { %p568_p2 = pnand %p566_p1, %p563_p0 }
   0x9   :  { %571 = shalt.err (!%p568_p2)
}
   0xa   :  { %s572_s10 = scalar_lea.vmem %s32_s25, 512  ;;  %p577_p4 = scmp.lt.s32.totalorder %s32_s25, %s32_s25 }
   0xb   :  { %p573_p3 = scmp.ne.s32.totalorder %s32_s25, %s572_s10  ;;  %p578_p5 = scmp.lt.s32.totalorder %s572_s10, %s572_s10 }
   0xd   :  { %p579_p6 = por %p578_p5, %p577_p4 }
   0xf   :  { %p580_p7 = pnand %p579_p6, %p573_p3 }
  0x11   :  { %583 = shalt.err (!%p580_p7)
}
  0x12   :  { %s681_s11 = smov 128   ;;  %s682_s12 = smov 8  }
  0x13   :  { %37 = dma.hbm_to_vmem [thread:$0]  %s830_s1, 512, %s32_s25, [#allocation6], %s681_s11, %s681_s11, %s682_s12  }
  0x14   :  { %s683_s15 = smov [#allocation2]   ;;  %s684_s17 = smov [#allocation7]  }
  0x15   :  { %s22_s16 = sshll.u32 %s683_s15, 4  ;;  %s45_s18 = sshll.u32 %s684_s17, 4  ;;  %s23_s16 = int_to_ptr.vmem [resolvable:$true] %s22_s16  ;;  %s46_s18 = int_to_ptr.vmem [resolvable:$true] %s45_s18 }
  0x16   :  { %s584_s21 = scalar_lea.hbm %s829_s0, 128 }
  0x17   :  { %p585_p8 = scmp.ne.s32.totalorder %s829_s0, %s584_s21  ;;  %p588_p9 = scmp.lt.u32.totalorder %s584_s21, %s829_s0 }
  0x19   :  { %p590_p10 = pnand %p588_p9, %p585_p8 }
  0x1b   :  { %593 = shalt.err (!%p590_p10)
}
  0x1c   :  { %s594_s1 = scalar_lea.vmem %s23_s16, 128  ;;  %p599_p12 = scmp.lt.s32.totalorder %s23_s16, %s23_s16 }
  0x1d   :  { %p595_p11 = scmp.ne.s32.totalorder %s23_s16, %s594_s1  ;;  %p600_p13 = scmp.lt.s32.totalorder %s594_s1, %s594_s1 }
  0x1f   :  { %p601_p0 = por %p600_p13, %p599_p12 }
  0x21   :  { %p602_p1 = pnand %p601_p0, %p595_p11 }
  0x23   :  { %605 = shalt.err (!%p602_p1)
}
  0x24   :  { %25 = dma.hbm_to_vmem [thread:$0]  %s829_s0, 128, %s23_s16, [#allocation3]  }
  0x25   :  { %s606_s30 = scalar_lea.hbm %s832_s3, 2048 }
  0x26   :  { %p607_p2 = scmp.ne.s32.totalorder %s832_s3, %s606_s30  ;;  %p610_p3 = scmp.lt.u32.totalorder %s606_s30, %s832_s3 }
  0x28   :  { %p612_p4 = pnand %p610_p3, %p607_p2 }
  0x2a   :  { %615 = shalt.err (!%p612_p4)
}
  0x2b   :  { %s616_s14 = scalar_lea.vmem %s46_s18, 2048  ;;  %p621_p6 = scmp.lt.s32.totalorder %s46_s18, %s46_s18 }
  0x2c   :  { %p617_p5 = scmp.ne.s32.totalorder %s46_s18, %s616_s14  ;;  %p622_p7 = scmp.lt.s32.totalorder %s616_s14, %s616_s14 }
  0x2e   :  { %p623_p8 = por %p622_p7, %p621_p6 }
  0x30   :  { %p624_p9 = pnand %p623_p8, %p617_p5 }
  0x32   :  { %627 = shalt.err (!%p624_p9)
}
  0x33   :  { %51 = dma.hbm_to_vmem [thread:$0]  %s832_s3, 2048, %s46_s18, [#allocation6], %s681_s11, %s681_s11, %s682_s12  }
  0x34   :  { %s685_s16 = smov [#allocation8]   ;;  %s628_s21 = scalar_lea.hbm %s834_s5, 2048 }
  0x35   :  { %s59_s17 = sshll.u32 %s685_s16, 4  ;;  %p629_p10 = scmp.ne.s32.totalorder %s834_s5, %s628_s21  ;;  %s60_s17 = int_to_ptr.vmem [resolvable:$true] %s59_s17 }
  0x36   :  { %p632_p11 = scmp.lt.u32.totalorder %s628_s21, %s834_s5 }
  0x38   :  { %p634_p12 = pnand %p632_p11, %p629_p10 }
  0x3a   :  { %637 = shalt.err (!%p634_p12)
}
  0x3b   :  { %s638_s1 = scalar_lea.vmem %s60_s17, 2048  ;;  %p643_p0 = scmp.lt.s32.totalorder %s60_s17, %s60_s17 }
  0x3c   :  { %p639_p13 = scmp.ne.s32.totalorder %s60_s17, %s638_s1  ;;  %p644_p1 = scmp.lt.s32.totalorder %s638_s1, %s638_s1 }
  0x3e   :  { %p645_p2 = por %p644_p1, %p643_p0 }
  0x40   :  { %p646_p3 = pnand %p645_p2, %p639_p13 }
  0x42   :  { %649 = shalt.err (!%p646_p3)
}
  0x43   :  { %65 = dma.hbm_to_vmem [thread:$0]  %s834_s5, 2048, %s60_s17, [#allocation9], %s681_s11, %s681_s11, %s682_s12  }
  0x44   :  { %672 = dma.done.wait [#allocation3], 128  }
  0x45   :  { %673 = vsyncadd [#allocation3], 4294967168 }
  0x46   :  { %674 = dma.done.wait [#allocation6], 2560  }
  0x47   :  { %675 = vsyncadd [#allocation6], 4294964736 }
  0x48   :  { %676 = dma.done.wait [#allocation9], 2048  }
  0x49   :  { %677 = vsyncadd [#allocation9], 4294965248  ;;  %v686_v0 = vmov 0.0|0.0   ;;  %vm687_vm0 = vmmov 0   ;;  %v688_v1 = vmov 0.0   ;;  %v81_v2 = vld [vmem:[#allocation5] sm:$0xff] }
  0x4a   :  { %498 = vmatprep.subr.bf16.mxu0 %v686_v0  ;;  %425 = vmatprep.mubr.msk.f32.mxu0 %vm687_vm0, %v688_v1  ;;  %v82_v3 = vld [vmem:[#allocation5 + $0x8] sm:$0xff]  ;;  %v83_v4 = vld [vmem:[#allocation5 + $0x10] sm:$0xff]  ;;  %v84_v6 = vld [vmem:[#allocation5 + $0x18] sm:$0xff]  ;;  %vm92_vm1 = vcmask 261120   ;;  %s689_s28 = smov [#allocation10]  }
  0x4b   :  { %504 = vmatprep.subr.bf16.mxu1 %v686_v0  ;;  %460 = vmatprep.mubr.msk.f32.mxu1 %vm687_vm0, %v688_v1  ;;  %v499_v5 = vpack.c.bf16 %v82_v3, %v81_v2  ;;  %v168_v7 = vld [vmem:[#allocation7] sm:$0xff]  ;;  %v169_v8 = vld [vmem:[#allocation7 + $0x8] sm:$0xff]  ;;  %v170_v9 = vld [vmem:[#allocation7 + $0x10] sm:$0xff]  ;;  %v502_v11 = vpack.c.bf16 %v84_v6, %v83_v4  ;;  %s363_s29 = sshll.u32 %s689_s28, 4  ;;  %s364_s29 = int_to_ptr.vmem [resolvable:$true] %s363_s29 }
  0x4c   :  { %v171_v10 = vld [vmem:[#allocation7 + $0x18] sm:$0xff]  ;;  %v505_v12 = vpack.c.bf16 %v169_v8, %v168_v7  ;;  %v172_v14 = vld [vmem:[#allocation7 + $0x20] sm:$0xff]  ;;  %v173_v15 = vld [vmem:[#allocation7 + $0x28] sm:$0xff]  ;;  %s650_s30 = scalar_lea.vmem %s364_s29, 128  ;;  %p655_p5 = scmp.lt.s32.totalorder %s364_s29, %s364_s29 }
  0x4d   :  { %500 = vmatpush3.bf16.msra.mxu0 %v499_v5  ;;  %v508_v13 = vpack.c.bf16 %v171_v10, %v170_v9  ;;  %v80_v16 = vld [vmem:[#allocation2] sm:$0xff]  ;;  %v511_v17 = vpack.c.bf16 %v173_v15, %v172_v14  ;;  %v174_v18 = vld [vmem:[#allocation7 + $0x30] sm:$0xff]  ;;  %v176_v21 = vld [vmem:[#allocation7 + $0x40] sm:$0xff]  ;;  %p651_p4 = scmp.ne.s32.totalorder %s364_s29, %s650_s30  ;;  %p656_p6 = scmp.lt.s32.totalorder %s650_s30, %s650_s30 }
  0x4e   :  { %501 = vmatprep.subr.bf16.mxu0 %v686_v0  ;;  %506 = vmatpush3.bf16.msra.mxu1 %v505_v12  ;;  %v175_v19 = vld [vmem:[#allocation7 + $0x38] sm:$0xff]  ;;  %v177_v22 = vld [vmem:[#allocation7 + $0x48] sm:$0xff]  ;;  %v178_v24 = vld [vmem:[#allocation7 + $0x50] sm:$0xff] }
  0x4f   :  { %507 = vmatprep.subr.bf16.mxu1 %v686_v0  ;;  %v514_v20 = vpack.c.bf16 %v175_v19, %v174_v18  ;;  %v517_v23 = vpack.c.bf16 %v177_v22, %v176_v21  ;;  %v179_v25 = vld [vmem:[#allocation7 + $0x58] sm:$0xff]  ;;  %v180_v27 = vld [vmem:[#allocation7 + $0x60] sm:$0xff]  ;;  %v181_v28 = vld [vmem:[#allocation7 + $0x68] sm:$0xff]  ;;  %p657_p7 = por %p656_p6, %p655_p5 }
  0x50   :  { %v520_v26 = vpack.c.bf16 %v179_v25, %v178_v24  ;;  %v523_v29 = vpack.c.bf16 %v181_v28, %v180_v27  ;;  %v182_v30 = vld [vmem:[#allocation7 + $0x70] sm:$0xff]  ;;  %v183_v31 = vld [vmem:[#allocation7 + $0x78] sm:$0xff]  ;;  %v263_v33 = vld [vmem:[#allocation8] sm:$0xff] }
  0x51   :  { %503 = vmatpush3.bf16.msra.mxu0 %v502_v11  ;;  %v526_v32 = vpack.c.bf16 %v183_v31, %v182_v30  ;;  %v264_v34 = vld [vmem:[#allocation8 + $0x8] sm:$0xff]  ;;  %v265_v35 = vld [vmem:[#allocation8 + $0x10] sm:$0xff]  ;;  %v266_v37 = vld [vmem:[#allocation8 + $0x18] sm:$0xff]  ;;  %p658_p8 = pnand %p657_p7, %p651_p4 }
  0x52   :  { %528 = vmatprep.subr.bf16.mxu0 %v686_v0  ;;  %509 = vmatpush3.bf16.msra.mxu1 %v508_v13  ;;  %v529_v36 = vpack.c.bf16 %v264_v34, %v263_v33  ;;  %v532_v38 = vpack.c.bf16 %v266_v37, %v265_v35  ;;  %v267_v39 = vld [vmem:[#allocation8 + $0x20] sm:$0xff]  ;;  %v268_v40 = vld [vmem:[#allocation8 + $0x28] sm:$0xff]  ;;  %v269_v42 = vld [vmem:[#allocation8 + $0x30] sm:$0xff] }
  0x53   :  { %510 = vmatprep.subr.bf16.mxu1 %v686_v0  ;;  %v535_v41 = vpack.c.bf16 %v268_v40, %v267_v39  ;;  %v270_v43 = vld [vmem:[#allocation8 + $0x38] sm:$0xff]  ;;  %v271_v45 = vld [vmem:[#allocation8 + $0x40] sm:$0xff]  ;;  %v272_v46 = vld [vmem:[#allocation8 + $0x48] sm:$0xff] }
  0x54   :  { %426 = vmatmul.mubr.msk.f32.vlgmr.msra.gmra.mrb[0].mxu0 %vm92_vm1, %v80_v16  ;;  %v538_v44 = vpack.c.bf16 %v270_v43, %v269_v42  ;;  %v541_v47 = vpack.c.bf16 %v272_v46, %v271_v45  ;;  %v273_v48 = vld [vmem:[#allocation8 + $0x50] sm:$0xff]  ;;  %v274_v49 = vld [vmem:[#allocation8 + $0x58] sm:$0xff]  ;;  %v275_v57 = vld [vmem:[#allocation8 + $0x60] sm:$0xff] }
  0x55   :  { %495 = vmatprep.mubr.msk.f32.mxu0 %vm687_vm0, %v688_v1  ;;  %530 = vmatpush3.bf16.msra.mxu0 %v529_v36  ;;  %v544_v50 = vpack.c.bf16 %v274_v49, %v273_v48  ;;  %v374_v51 = vld [vmem:[%s831_s2] ss:$0 sm:$0xff]  ;;  %v276_v58 = vld [vmem:[#allocation8 + $0x68] sm:$0xff]  ;;  %v277_v60 = vld [vmem:[#allocation8 + $0x70] sm:$0xff] }
  0x56   :  { %512 = vmatpush3.bf16.msra.mxu1 %v511_v17  ;;  %531 = vmatprep.subr.bf16.mxu0 %v686_v0  ;;  %v547_v59 = vpack.c.bf16 %v276_v58, %v275_v57  ;;  %v278_v61 = vld [vmem:[#allocation8 + $0x78] sm:$0xff] }
  0x57   :  { %513 = vmatprep.subr.bf16.mxu1 %v686_v0  ;;  %v550_v62 = vpack.c.bf16 %v278_v61, %v277_v60  ;;  %v376_v63 = vld [vmem:[%s833_s4] ss:$0 sm:$0xff] }
  0x58   :  { %v377_v6 = vld [vmem:[%s835_s6] ss:$0 sm:$0xff] }
  0x59   :  { %533 = vmatpush3.bf16.msra.mxu0 %v532_v38 }
  0x5a   :  { %515 = vmatpush3.bf16.msra.mxu1 %v514_v20  ;;  %534 = vmatprep.subr.bf16.mxu0 %v686_v0 }
  0x5b   :  { %516 = vmatprep.subr.bf16.mxu1 %v686_v0 }
  0x5d   :  { %536 = vmatpush3.bf16.msra.mxu0 %v535_v41 }
  0x5e   :  { %518 = vmatpush3.bf16.msra.mxu1 %v517_v23  ;;  %537 = vmatprep.subr.bf16.mxu0 %v686_v0 }
  0x5f   :  { %519 = vmatprep.subr.bf16.mxu1 %v686_v0 }
  0x61   :  { %539 = vmatpush3.bf16.msra.mxu0 %v538_v44 }
  0x62   :  { %521 = vmatpush3.bf16.msra.mxu1 %v520_v26  ;;  %540 = vmatprep.subr.bf16.mxu0 %v686_v0 }
  0x63   :  { %522 = vmatprep.subr.bf16.mxu1 %v686_v0 }
  0x65   :  { %542 = vmatpush3.bf16.msra.mxu0 %v541_v47 }
  0x66   :  { %524 = vmatpush3.bf16.msra.mxu1 %v523_v29  ;;  %543 = vmatprep.subr.bf16.mxu0 %v686_v0 }
  0x67   :  { %525 = vmatprep.subr.bf16.mxu1 %v686_v0 }
  0x69   :  { %545 = vmatpush3.bf16.msra.mxu0 %v544_v50 }
  0x6a   :  { %527 = vmatpush3.bf16.msra.mxu1 %v526_v32  ;;  %546 = vmatprep.subr.bf16.mxu0 %v686_v0 }
  0x6d   :  { %548 = vmatpush3.bf16.msra.mxu0 %v547_v59 }
  0x6e   :  { %549 = vmatprep.subr.bf16.mxu0 %v686_v0 }
  0x71   :  { %551 = vmatpush3.bf16.msra.mxu0 %v550_v62 }
 0x127   :  { %v162_v52 = vpop.f32.mrb[0].mxu0 }
 0x128   :  { %v163_v53 = vadd.f32 %v374_v51, %v162_v52  ;;  %v427_v54 = vpop.f32.mrb[1].mxu0 }
 0x12a   :  { %v166_v55 = vmul.f32 0.01, %v163_v53 }
 0x12c   :  { %v167_v56 = vmax.f32 %v163_v53, %v166_v55 }
 0x12e   :  { %461 = vmatmul.mubr.f32.vlgmr.msra.gmra.mrb[0].mxu1 %v167_v56 }
 0x201   :  { %v257_v1 = vpop.f32.mrb[0].mxu1 }
 0x202   :  { %v258_v2 = vadd.f32 %v376_v63, %v257_v1  ;;  %v462_v3 = vpop.f32.mrb[1].mxu1 }
 0x204   :  { %v261_v4 = vmul.f32 0.01, %v258_v2 }
 0x206   :  { %v262_v5 = vmax.f32 %v258_v2, %v261_v4 }
 0x208   :  { %496 = vmatmul.mubr.f32.vlgmr.msra.gmra.mrb[2].mxu0 %v262_v5 }
 0x2db   :  { %v352_v0 = vpop.f32.mrb[2].mxu0 }
 0x2dc   :  { %v353_v7 = vadd.f32 %v377_v6, %v352_v0  ;;  %v497_v8 = vpop.f32.mrb[3].mxu0 }
 0x2de   :  { %356 = vst [vmem:[#allocation10] sm:$0xff] %v353_v7 }
 0x2df   :  { %661 = shalt.err (!%p658_p8)
}
 0x2e0   :  { %s662_s9 = scalar_lea.hbm %s836_s7, 128 }
 0x2e1   :  { %p663_p9 = scmp.ne.s32.totalorder %s836_s7, %s662_s9  ;;  %p666_p10 = scmp.lt.u32.totalorder %s662_s9, %s836_s7 }
 0x2e3   :  { %p668_p11 = pnand %p666_p10, %p663_p9 }
 0x2e5   :  { %671 = shalt.err (!%p668_p11)
}
 0x2e6   :  { %366 = dma.vmem_to_hbm [thread:$0]  %s364_s29, 128, %s836_s7, [#allocation4]  }
 0x2e7   :  { %678 = dma.done.wait [#allocation4], 128  }
 0x2e8   :  { %679 = vsyncadd [#allocation4], 4294967168 }
 0x2e9   :  { %370 = vsyncpa [#allocation3], 1 }
 0x2ea   :  { %371 = vsyncpa [#allocation6], 1 }
 0x2eb   :  { %372 = vsyncpa [#allocation9], 1 }
 0x2ec   :  { %373 = vsyncpa [#allocation4], 1 }

</bundles_post_ra>
